<compile_context>
chip_gen: v5e
topology: v5e:2x2
jax: 0.10.0
libtpu: 0.0.40
codegen_flags: <defaults>
</compile_context>

<pallas_src>
import jax
import jax.numpy as jnp
from jax.experimental import pallas as pl
from jax.experimental.pallas import tpu as pltpu


def _pick_tile_s(S, cap=16384):
    """Largest multiple of 128 that divides S (capped); else the full S."""
    if S % 128 != 0:
        return S
    best = 128
    for cand in range(128, min(S, cap) + 1, 128):
        if S % cand == 0:
            best = cand
    return best


# ---------- Pass 1: per-channel partial sums / sums-of-squares of y = W @ x + b --------
def conv_stats_kernel(x_ref, w_ref, b_ref, sum_ref, sq_ref):
    @pl.when(pl.program_id(1) == 0)
    def _():
        sum_ref[...] = jnp.zeros_like(sum_ref)
        sq_ref[...] = jnp.zeros_like(sq_ref)

    x = x_ref[0]                                                    # (Cin, tile_s)
    y = jnp.dot(w_ref[...], x, preferred_element_type=jnp.float32)  # (Cout, tile_s)
    y = y + b_ref[...]                                              # + bias (Cout, 1)
    sum_ref[...] += jnp.sum(y, axis=1)[None, None, :]
    sq_ref[...] += jnp.sum(y * y, axis=1)[None, None, :]


# ---------- Pass 2: BN folded into the conv, writes the final output -------------------
def conv_bn_fold_kernel(x_ref, wf_ref, bf_ref, o_ref):
    o_ref[0] = (jnp.dot(wf_ref[...], x_ref[0],
                        preferred_element_type=jnp.float32) + bf_ref[...]
                ).astype(o_ref.dtype)


def pointwise_conv_bn(x_nchw, weight, bias, gamma, beta, *, stride=1, eps=1e-5):
    """Forward of PointWise_Conv: BN(Conv2d(x, k=1, stride=(stride,1))), training-mode stats."""
    N, Cin, H, W = x_nchw.shape
    Cout = weight.shape[0]

    # 1x1 conv with stride=(stride, 1) == subsample rows of H.  For stride == 1 this is
    # a no-op (no copy).
    # TODO(synk): fold stride>1 H-subsampling into the BlockSpec index_map to avoid the slice copy.
    x_s = x_nchw if stride == 1 else x_nchw[:, :, ::stride, :]
    Ho = x_s.shape[2]
    S = Ho * W

    # Contiguous trailing dims collapse: no transpose, no data movement.
    x_r = x_s.reshape(N, Cin, S).astype(jnp.float32)
    w2 = weight.reshape(Cout, Cin).astype(jnp.float32)
    b_col = bias.reshape(Cout, 1).astype(jnp.float32)

    tile_s = _pick_tile_s(S)
    grid = (N, S // tile_s)

    sum_p, sq_p = pl.pallas_call(
        conv_stats_kernel,
        out_shape=(jax.ShapeDtypeStruct((N, 1, Cout), jnp.float32),
                   jax.ShapeDtypeStruct((N, 1, Cout), jnp.float32)),
        grid_spec=pltpu.PrefetchScalarGridSpec(
            num_scalar_prefetch=0, grid=grid,
            in_specs=[pl.BlockSpec((1, Cin, tile_s), lambda n, s: (n, 0, s)),
                      pl.BlockSpec((Cout, Cin), lambda n, s: (0, 0)),
                      pl.BlockSpec((Cout, 1), lambda n, s: (0, 0))],
            out_specs=(pl.BlockSpec((1, 1, Cout), lambda n, s: (n, 0, 0)),
                       pl.BlockSpec((1, 1, Cout), lambda n, s: (n, 0, 0)))),
        compiler_params=pltpu.CompilerParams(
            dimension_semantics=("parallel", "arbitrary")),
    )(x_r, w2, b_col)

    # Finalize batch statistics and fold BN into the conv weights (O(Cout*Cin) glue).
    M = N * S
    s_tot = jnp.sum(sum_p, axis=(0, 1))
    sq_tot = jnp.sum(sq_p, axis=(0, 1))
    mean = s_tot / M
    var = jnp.maximum(sq_tot / M - mean * mean, 0.0)   # biased var (PyTorch BN training), clamped
    invstd = jax.lax.rsqrt(var + eps)

    scale = gamma.astype(jnp.float32) * invstd                       # (Cout,)
    w_fold = w2 * scale[:, None]                                     # (Cout, Cin)
    b_fold = ((bias.astype(jnp.float32) - mean) * scale
              + beta.astype(jnp.float32)).reshape(Cout, 1)           # (Cout, 1)

    out = pl.pallas_call(
        conv_bn_fold_kernel,
        out_shape=jax.ShapeDtypeStruct((N, Cout, S), jnp.float32),
        grid_spec=pltpu.PrefetchScalarGridSpec(
            num_scalar_prefetch=0, grid=grid,
            in_specs=[pl.BlockSpec((1, Cin, tile_s), lambda n, s: (n, 0, s)),
                      pl.BlockSpec((Cout, Cin), lambda n, s: (0, 0)),
                      pl.BlockSpec((Cout, 1), lambda n, s: (0, 0))],
            out_specs=pl.BlockSpec((1, Cout, tile_s), lambda n, s: (n, 0, s))),
        compiler_params=pltpu.CompilerParams(
            dimension_semantics=("parallel", "parallel")),
    )(x_r, w_fold, b_fold)

    return out.reshape(N, Cout, Ho, W)   # already NCHW: no transpose needed


def reference(x, weight, bias, gamma, beta, *, stride=1, eps=1e-5):
    """Pure-JAX reference of BN(Conv1x1(x)) with training-mode batch statistics."""
    x_s = x[:, :, ::stride, :]
    w2 = weight.reshape(weight.shape[0], weight.shape[1])
    y = jnp.einsum('nchw,oc->nohw', x_s, w2) + bias[None, :, None, None]
    mean = y.mean(axis=(0, 2, 3), keepdims=True)
    var = y.var(axis=(0, 2, 3), keepdims=True)       # biased
    return (y - mean) * jax.lax.rsqrt(var + eps) * gamma[None, :, None, None] \
        + beta[None, :, None, None]


if __name__ == "__main__":
    # Small shapes consistent with the module: NCHW input, 1x1 conv Cin->Cout.
    N, Cin, H, W = 2, 4, 16, 16
    Cout = 8
    stride = 1

    key = jax.random.PRNGKey(0)
    kx, kw, kb = jax.random.split(key, 3)

    x = jax.random.normal(kx, (N, Cin, H, W), dtype=jnp.float32)
    weight = jax.random.normal(kw, (Cout, Cin, 1, 1), dtype=jnp.float32) * 0.1
    bias = jax.random.normal(kb, (Cout,), dtype=jnp.float32) * 0.05
    gamma = jnp.ones((Cout,), dtype=jnp.float32)    # BN default affine init
    beta = jnp.zeros((Cout,), dtype=jnp.float32)

    out = pointwise_conv_bn(x, weight, bias, gamma, beta, stride=stride)
    out = jax.block_until_ready(out)

    ref = reference(x, weight, bias, gamma, beta, stride=stride)
    assert out.shape == ref.shape == (N, Cout, H, W)
    assert jnp.allclose(out, ref, atol=1e-4, rtol=1e-4), \
        f"max abs diff {jnp.max(jnp.abs(out - ref))}"

    print("KERNEL_OK")
</pallas_src>

<mosaic_0001>
module attributes {stable_mosaic.version = 11 : i64} {
  func.func @conv_stats_kernel(%arg0: i32, %arg1: i32, %arg2: memref<1x4x256xf32, #tpu.memory_space<vmem>>, %arg3: memref<8x4xf32, #tpu.memory_space<vmem>>, %arg4: memref<8x1xf32, #tpu.memory_space<vmem>>, %arg5: memref<1x1x8xf32, #tpu.memory_space<vmem>>, %arg6: memref<1x1x8xf32, #tpu.memory_space<vmem>>) attributes {dimension_semantics = [#tpu.dimension_semantics<parallel>, #tpu.dimension_semantics<arbitrary>], iteration_bounds = array<i64: 2, 1>, scalar_prefetch = 0 : i64, scratch_operands = 0 : i64, tpu.core_type = #tpu.core_type<tc>, window_params = [{transform_indices = @transform_0, window_bounds = array<i64: 1, 4, 256>}, {pipeline_mode = #tpu.pipeline_mode<synchronous>, transform_indices = @transform_1, window_bounds = array<i64: 8, 4>}, {pipeline_mode = #tpu.pipeline_mode<synchronous>, transform_indices = @transform_2, window_bounds = array<i64: 8, 1>}, {transform_indices = @transform_3, window_bounds = array<i64: 1, 1, 8>}, {transform_indices = @transform_4, window_bounds = array<i64: 1, 1, 8>}]} {
    %c0_i32 = arith.constant 0 : i32
    %0 = arith.cmpi eq, %arg1, %c0_i32 : i32
    %1 = arith.extui %0 : i1 to i32
    %c0_i32_0 = arith.constant 0 : i32
    %2 = arith.cmpi ne, %1, %c0_i32_0 : i32
    scf.if %2 {
      %cst_21 = arith.constant 0.000000e+00 : f32
      %21 = vector.broadcast %cst_21 : f32 to vector<1x1x8xf32>
      %c0_22 = arith.constant 0 : index
      %c0_23 = arith.constant 0 : index
      %c0_24 = arith.constant 0 : index
      %22 = vector.load %arg5[%c0_22, %c0_23, %c0_24] : memref<1x1x8xf32, #tpu.memory_space<vmem>>, vector<1x1x8xf32>
      tpu.vector_store %arg5[%c0_22, %c0_23, %c0_24], %21 {strides = array<i32>} : memref<1x1x8xf32, #tpu.memory_space<vmem>>, vector<1x1x8xf32>,
      %cst_25 = arith.constant 0.000000e+00 : f32
      %23 = vector.broadcast %cst_25 : f32 to vector<1x1x8xf32>
      %c0_26 = arith.constant 0 : index
      %c0_27 = arith.constant 0 : index
      %c0_28 = arith.constant 0 : index
      %24 = vector.load %arg6[%c0_26, %c0_27, %c0_28] : memref<1x1x8xf32, #tpu.memory_space<vmem>>, vector<1x1x8xf32>
      tpu.vector_store %arg6[%c0_26, %c0_27, %c0_28], %23 {strides = array<i32>} : memref<1x1x8xf32, #tpu.memory_space<vmem>>, vector<1x1x8xf32>,
    } else {
    }
    %c0 = arith.constant 0 : index
    %c0_1 = arith.constant 0 : index
    %c0_2 = arith.constant 0 : index
    %3 = vector.load %arg2[%c0, %c0_1, %c0_2] : memref<1x4x256xf32, #tpu.memory_space<vmem>>, vector<1x4x256xf32>
    %4 = vector.shape_cast %3 : vector<1x4x256xf32> to vector<4x256xf32>
    %c0_3 = arith.constant 0 : index
    %c0_4 = arith.constant 0 : index
    %5 = vector.load %arg3[%c0_3, %c0_4] : memref<8x4xf32, #tpu.memory_space<vmem>>, vector<8x4xf32>
    %cst = arith.constant dense<0.000000e+00> : vector<8x256xf32>
    %6 = tpu.matmul %5, %4, %cst {dimension_numbers = #tpu.dot_dimension_numbers<[1], [0], [0], [1], [0, 0, 1, 1], [], []>} : vector<8x4xf32>, vector<4x256xf32>, vector<8x256xf32> -> vector<8x256xf32>
    %c0_5 = arith.constant 0 : index
    %c0_6 = arith.constant 0 : index
    %7 = vector.load %arg4[%c0_5, %c0_6] : memref<8x1xf32, #tpu.memory_space<vmem>>, vector<8x1xf32>
    %8 = vector.broadcast %7 : vector<8x1xf32> to vector<8x256xf32>
    %9 = arith.addf %6, %8 : vector<8x256xf32>
    %c0_7 = arith.constant 0 : index
    %c0_8 = arith.constant 0 : index
    %c0_9 = arith.constant 0 : index
    %10 = vector.load %arg5[%c0_7, %c0_8, %c0_9] : memref<1x1x8xf32, #tpu.memory_space<vmem>>, vector<1x1x8xf32>
    %cst_10 = arith.constant dense<0.000000e+00> : vector<8xf32>
    %11 = vector.multi_reduction <add>, %9, %cst_10 [1] : vector<8x256xf32> to vector<8xf32>
    %12 = vector.shape_cast %11 : vector<8xf32> to vector<1x1x8xf32>
    %13 = arith.addf %10, %12 : vector<1x1x8xf32>
    %c0_11 = arith.constant 0 : index
    %c0_12 = arith.constant 0 : index
    %c0_13 = arith.constant 0 : index
    %14 = vector.load %arg5[%c0_11, %c0_12, %c0_13] : memref<1x1x8xf32, #tpu.memory_space<vmem>>, vector<1x1x8xf32>
    tpu.vector_store %arg5[%c0_11, %c0_12, %c0_13], %13 {strides = array<i32>} : memref<1x1x8xf32, #tpu.memory_space<vmem>>, vector<1x1x8xf32>,
    %c0_14 = arith.constant 0 : index
    %c0_15 = arith.constant 0 : index
    %c0_16 = arith.constant 0 : index
    %15 = vector.load %arg6[%c0_14, %c0_15, %c0_16] : memref<1x1x8xf32, #tpu.memory_space<vmem>>, vector<1x1x8xf32>
    %16 = arith.mulf %9, %9 : vector<8x256xf32>
    %cst_17 = arith.constant dense<0.000000e+00> : vector<8xf32>
    %17 = vector.multi_reduction <add>, %16, %cst_17 [1] : vector<8x256xf32> to vector<8xf32>
    %18 = vector.shape_cast %17 : vector<8xf32> to vector<1x1x8xf32>
    %19 = arith.addf %15, %18 : vector<1x1x8xf32>
    %c0_18 = arith.constant 0 : index
    %c0_19 = arith.constant 0 : index
    %c0_20 = arith.constant 0 : index
    %20 = vector.load %arg6[%c0_18, %c0_19, %c0_20] : memref<1x1x8xf32, #tpu.memory_space<vmem>>, vector<1x1x8xf32>
    tpu.vector_store %arg6[%c0_18, %c0_19, %c0_20], %19 {strides = array<i32>} : memref<1x1x8xf32, #tpu.memory_space<vmem>>, vector<1x1x8xf32>,
    return
  }
  func.func @transform_0(%arg0: i32, %arg1: i32) -> (i32, i32, i32) {
    %c0_i32 = arith.constant 0 : i32
    %c0_i32_0 = arith.constant 0 : i32
    return %arg0, %c0_i32, %arg1 : i32, i32, i32
  }
  func.func @transform_1(%arg0: i32, %arg1: i32) -> (i32, i32) {
    %c0_i32 = arith.constant 0 : i32
    %c0_i32_0 = arith.constant 0 : i32
    %c0_i32_1 = arith.constant 0 : i32
    return %c0_i32, %c0_i32_0 : i32, i32
  }
  func.func @transform_2(%arg0: i32, %arg1: i32) -> (i32, i32) {
    %c0_i32 = arith.constant 0 : i32
    %c0_i32_0 = arith.constant 0 : i32
    %c0_i32_1 = arith.constant 0 : i32
    return %c0_i32, %c0_i32_0 : i32, i32
  }
  func.func @transform_3(%arg0: i32, %arg1: i32) -> (i32, i32, i32) {
    %c0_i32 = arith.constant 0 : i32
    %c0_i32_0 = arith.constant 0 : i32
    %c0_i32_1 = arith.constant 0 : i32
    return %arg0, %c0_i32, %c0_i32_0 : i32, i32, i32
  }
  func.func @transform_4(%arg0: i32, %arg1: i32) -> (i32, i32, i32) {
    %c0_i32 = arith.constant 0 : i32
    %c0_i32_0 = arith.constant 0 : i32
    %c0_i32_1 = arith.constant 0 : i32
    return %arg0, %c0_i32, %c0_i32_0 : i32, i32, i32
  }
}

</mosaic_0001>

<bundles_post_ra>
// kernel: tpu_custom_call.1
= control target key start
LH: loop header
LB: loop body
LE: loop exit
PB: predicated region body
PF: predicated region fallthrough
CT: control target
= control target key end

     0   :  { %10 = vsyncpa [#allocation3], 0  ;;  %s862_s0 = inlined_call_operand.vmem [shape: f32[2,4,256], index: 0, kind: input, shape index: {}]   ;;  %s863_s1 = inlined_call_operand.vmem [shape: f32[8,4], index: 1, kind: input, shape index: {}]   ;;  %s864_s2 = inlined_call_operand.vmem [shape: f32[8,1], index: 2, kind: input, shape index: {}]   ;;  %s865_s3 = inlined_call_operand.hbm [shape: f32[2,1,8], index: 3, kind: output, shape index: {0}]   ;;  %s866_s4 = inlined_call_operand.hbm [shape: f32[2,1,8], index: 4, kind: output, shape index: {1}]  }
   0x1   :  { %12 = vsyncpa [#allocation3 + $0x1], 0 }
   0x2   :  { %13 = vsyncpa [#allocation5], 0 }
   0x3   :  { %15 = vsyncpa [#allocation5 + $0x1], 0  ;;  %s723_s15 = smov 0   ;;  %s725_s16 = smov 0  }
   0x4   :  { %s727_s17 = smov 0   ;;  %s729_s18 = smov 0  }
   0x5   :  { %s731_s19 = smov 0   ;;  %s733_s20 = smov 0  }
   0x6 LB: > { %s505_s21 = sadd.s32 4294967295, %s694_s20   ;;  %s506_s22 = sadd.s32 4294967294, %s694_s20   ;;  %s694_s20 = sphi %s733_s20, %s21_s20   ;;  %s690_s19 = sphi %s731_s19, %s873_s19   ;;  %s686_s18 = sphi %s729_s18, %s872_s18   ;;  %s682_s17 = sphi %s727_s17, %s871_s17   ;;  %s678_s16 = sphi %s725_s16, %s870_s16   ;;  %s674_s15 = sphi %s723_s15, %s869_s15  }
   0x7   : > { %s33_s23 = sadd.s32 1, %s690_s19  ;;  %s110_s24 = sadd.s32 1, %s682_s17 }
   0x8   : > { %p35_p0 = scmp.ge.s32.totalorder %s33_s23, 2  ;;  %p120_p1 = scmp.ne.s32.totalorder %s682_s17, %s678_s16 }
   0x9   : > { %p121_p2 = scmp.eq.s32.totalorder %s505_s21, 1  ;;  %p126_p3 = scmp.ne.s32.totalorder %s678_s16, %s674_s15 }
   0xa   : > { %s875_s23 = smov (%p35_p0, %s33_s23), 0  ;;  %p127_p5 = scmp.eq.s32.totalorder %s506_s22, 1 }
   0xb   : > { %p763_p4 = por %p121_p2, %p120_p1  ;;  %s107_s26 = ssub.s32 %s690_s19, %s875_s23 }
   0xc   : > { %p509_p6 = scmp.ge.s32.totalorder %s694_s20, 1  ;;  %p108_p7 = scmp.eq.s32.totalorder %s107_s26, 0 }
   0xd   : > { %p770_p8 = por %p127_p5, %p126_p3  ;;  %p190_p9 = scmp.lt.s32.totalorder %s694_s20, 3 }
   0xe   : > { %s776_s28 = scalar_select %p108_p7, %s682_s17, %s110_s24  }
   0xf   : > { %p191_p10 = pnand %p509_p6, %p190_p9 }
  0x10   : > { %p224_p11 = scmp.lt.s32.totalorder (!%p191_p10), %s686_s18, 1  ;;  %s790_s12 = sand.u32 (!%p191_p10), 1, %s678_s16  }
  0x11   : > { %194 = sbr.rel (%p191_p10) target bundleno = 425 (0x1a9), region = 32  ;;  %s793_s13 = scalar_lea.vmem (!%p191_p10), [#allocation4], %s790_s12 }
  0x12   : > { %s798_s14 = scalar_lea.vmem (!%p191_p10), [#allocation2], %s790_s12  ;;  %s404_s24 = scalar_lea.hbm (!%p191_p10), %s866_s4, %s686_s18 }
  0x13   : > { %s406_s26 = sshll.u32 (!%p191_p10), %s793_s13, 4  ;;  %s408_s29 = sshll.u32 (!%p191_p10), %s404_s24, 4  ;;  %s407_s26 = int_to_ptr.vmem [resolvable:$true] %s406_s26  ;;  %s409_s29 = int_to_ptr.hbm [resolvable:$true] %s408_s29 }
  0x14   : > { %s383_s7 = scalar_lea.sflag (!%p191_p10), [#allocation5], %s790_s12  ;;  %s598_s8 = sshra.s32 (!%p191_p10), %s409_s29, 4  ;;  %s599_s8 = int_to_ptr.hbm [resolvable:$true] %s598_s8 }
  0x15   : > { %s604_s21 = scalar_lea.hbm (!%p191_p10), %s866_s4, 2  ;;  %p605_p1 = scmp.lt.s32.totalorder (!%p191_p10), %s599_s8, %s866_s4 }
  0x16   : > { %v242_v0 = vld [vmem:[%s864_s2] sm:$0xff]  ;;  %v696_v1 = vmov 0   ;;  %s225_s5 = scalar_select %p224_p11, %s686_s18, 1  ;;  %vm256_vm0 = vcmask 1043456   ;;  %vm252_vm1 = vcmask 31744   ;;  %vm237_vm2 = vcmask 57344  }
  0x17   : > { %581 = vset.pattern.permute.xlu0 %v696_v1  ;;  %582 = vset.pattern.permute.xlu1 %v696_v1  ;;  %v241_v3 = vld [vmem:[%s863_s1] sm:$0xff]  ;;  %v697_v24 = vmov 0.0   ;;  %v333_v36 = vlaneseq }
  0x18   : > { %245 = vperm.xlu0 %581, %v242_v0   ;;  %583 = vset.pattern.permute.xlu2 %v696_v1  ;;  %s518_s6 = sshll.u32 %s225_s5, 3  ;;  %239 = vst.msk [vmem:[%s793_s13] sm:$0x1] %vm237_vm2, %v697_v24 }
  0x19   : > { %s231_s9 = scalar_lea.vmem %s862_s0, %s518_s6  ;;  %238 = vst.msk [vmem:[%s798_s14] sm:$0x1] %vm237_vm2, %v697_v24  ;;  %v334_v37 = vand.u32 127, %v333_v36  ;;  %s391_s6 = scalar_lea.hbm %s865_s3, %s686_s18 }
  0x1a   : > { %v240_v2 = vld [vmem:[%s231_s9] sm:$0xff]  ;;  %s600_s9 = scalar_lea.hbm %s599_s8, 1 }
  0x1b   : > { %249 = vst [vmem:[#allocation1] ss:$2 sm:$0xff] %v240_v2  ;;  %p601_p12 = scmp.ne.s32.totalorder %s599_s8, %s600_s9  ;;  %p606_p2 = scmp.lt.s32.totalorder %s604_s21, %s600_s9 }
  0x1d   : > { %p602_p13 = pnand %p601_p12, %p763_p4  ;;  %p607_p3 = por %p606_p2, %p605_p1 }
  0x1f   : > { %v340_v39 = vld [vmem:[%s793_s13] sm:$0x1]  ;;  %p603_p0 = pneg %p602_p13 }
  0x21   : > { %p608_p5 = pnand %p607_p3, %p603_p0 }
  0x22   : > { %v250_v4 = vld.sshfl [vmem:[#allocation1] sm:$0xff pattern:$0x75316420]  ;;  %v251_v5 = vld.sshfl [vmem:[#allocation1 + $0x8] sm:$0xff pattern:$0x75316420] }
  0x23   : > { %512 = vmatpush.msk.msra.mxu0 %vm256_vm0, %v250_v4  ;;  %514 = vmatpush.msk.msra.mxu1 %vm256_vm0, %v251_v5 }
  0x24   : > { %513 = vmatmul.msk.f32.vlgmr.msra.gmra.mxu0 %vm252_vm1, %v241_v3  ;;  %515 = vmatmul.msk.f32.vlgmr.msra.gmra.mxu1 %vm252_vm1, %v241_v3 }
  0x8a   : > { %v246_v6 = vpop.permute.xlu0 %245 }
  0xa1   : > { %v278_v7 = vpop.f32.mrf.mxu0  ;;  %v298_v8 = vpop.f32.mrf.mxu1 }
  0xa2   : > { %v279_v9 = vadd.f32 %v278_v7, %v246_v6  ;;  %v299_v10 = vadd.f32 %v298_v8, %v246_v6 }
  0xa4   : > { %v302_v11 = vadd.f32 %v299_v10, %v279_v9  ;;  %v341_v12 = vmul.f32 %v279_v9, %v279_v9  ;;  %v342_v13 = vmul.f32 %v299_v10, %v299_v10 }
  0xa6   : > { %303 = vadd.xlane.f32.xlu0 %v302_v11  ;;  %v343_v14 = vadd.f32 %v342_v13, %v341_v12 }
  0xa8   : > { %344 = vadd.xlane.f32.xlu1 %v343_v14 }
 0x119   : > { %v304_v15 = vpop.xlane.xlu0 %303 }
 0x11a   : > { %v306_v16 = vperm.slane %v304_v15, 0  ;;  %v307_v17 = vperm.slane %v304_v15, 1  ;;  %v308_v18 = vperm.slane %v304_v15, 2  ;;  %v309_v19 = vperm.slane %v304_v15, 3 }
 0x11b   : > { %v310_v20 = vperm.slane %v304_v15, 4  ;;  %v311_v21 = vperm.slane %v304_v15, 5  ;;  %v312_v22 = vperm.slane %v304_v15, 6  ;;  %v313_v23 = vperm.slane %v304_v15, 7  ;;  %v345_v25 = vpop.xlane.xlu1 %344 }
 0x11c   : > { %314 = vst [vmem:[#allocation1] ss:$9 sm:$0xff] %v306_v16  ;;  %v347_v26 = vperm.slane %v345_v25, 0  ;;  %v348_v27 = vperm.slane %v345_v25, 1  ;;  %v349_v29 = vperm.slane %v345_v25, 2  ;;  %v350_v30 = vperm.slane %v345_v25, 3 }
 0x11d   : > { %316 = vst [vmem:[#allocation1 + $0x1] ss:$9 sm:$0xff] %v307_v17  ;;  %v351_v31 = vperm.slane %v345_v25, 4  ;;  %v352_v32 = vperm.slane %v345_v25, 5  ;;  %v353_v33 = vperm.slane %v345_v25, 6  ;;  %v354_v34 = vperm.slane %v345_v25, 7 }
 0x11e   : > { %318 = vst [vmem:[#allocation1 + $0x2] ss:$9 sm:$0xff] %v308_v18 }
 0x11f   : > { %320 = vst [vmem:[#allocation1 + $0x3] ss:$9 sm:$0xff] %v309_v19 }
 0x120   : > { %322 = vst [vmem:[#allocation1 + $0x4] ss:$9 sm:$0xff] %v310_v20 }
 0x121   : > { %324 = vst [vmem:[#allocation1 + $0x5] ss:$9 sm:$0xff] %v311_v21 }
 0x122   : > { %326 = vst [vmem:[#allocation1 + $0x6] ss:$9 sm:$0xff] %v312_v22 }
 0x123   : > { %328 = vst [vmem:[#allocation1 + $0x7] ss:$9 sm:$0xff] %v313_v23 }
 0x12a   : > { %v329_v28 = vld [vmem:[#allocation1] sm:$0xff] }
 0x12b   : > { %331 = vperm.xlu1 %582, %v329_v28   ;;  %355 = vst [vmem:[#allocation1] ss:$9 sm:$0xff] %v347_v26 }
 0x12c   : > { %357 = vst [vmem:[#allocation1 + $0x1] ss:$9 sm:$0xff] %v348_v27 }
 0x12d   : > { %359 = vst [vmem:[#allocation1 + $0x2] ss:$9 sm:$0xff] %v349_v29 }
 0x12e   : > { %361 = vst [vmem:[#allocation1 + $0x3] ss:$9 sm:$0xff] %v350_v30 }
 0x12f   : > { %363 = vst [vmem:[#allocation1 + $0x4] ss:$9 sm:$0xff] %v351_v31 }
 0x130   : > { %365 = vst [vmem:[#allocation1 + $0x5] ss:$9 sm:$0xff] %v352_v32 }
 0x131   : > { %367 = vst [vmem:[#allocation1 + $0x6] ss:$9 sm:$0xff] %v353_v33 }
 0x132   : > { %369 = vst [vmem:[#allocation1 + $0x7] ss:$9 sm:$0xff] %v354_v34 }
 0x139   : > { %v370_v35 = vld [vmem:[#allocation1] sm:$0xff] }
 0x13a   : > { %372 = vperm.xlu2 %583, %v370_v35  }
 0x194   : > { %v373_v38 = vpop.permute.xlu2 %372 }
 0x195   : > { %v374_v40 = vperm.slane %v373_v38, %v334_v37 }
 0x197   : > { %v376_v41 = vadd.f32 %v374_v40, %v340_v39 }
 0x199   : > { %377 = vst.msk [vmem:[%s793_s13] sm:$0x1] %vm237_vm2, %v376_v41 }
 0x19a   : > { %611 = shalt.err (!%p608_p5)
}
 0x19b   : > { %520 = dma.vmem_to_hbm [thread:$0]  (%p763_p4), %s407_s26, 16, %s409_s29, %s383_s7   ;;  %v301_v43 = vld [vmem:[%s798_s14] sm:$0x1] }
 0x19c   : > { %s393_s18 = sshll.u32 %s798_s14, 4  ;;  %s395_s13 = sshll.u32 %s391_s6, 4  ;;  %s394_s18 = int_to_ptr.vmem [resolvable:$true] %s393_s18  ;;  %s396_s13 = int_to_ptr.hbm [resolvable:$true] %s395_s13 }
 0x19d   : > { %v332_v42 = vpop.permute.xlu1 %331  ;;  %s379_s30 = scalar_lea.sflag [#allocation3], %s790_s12  ;;  %s626_s5 = sshra.s32 %s396_s13, 4  ;;  %s627_s5 = int_to_ptr.hbm [resolvable:$true] %s626_s5 }
 0x19e   : > { %v335_v44 = vperm.slane %v332_v42, %v334_v37  ;;  %s628_s8 = scalar_lea.hbm %s627_s5, 1  ;;  %s632_s29 = scalar_lea.hbm %s865_s3, 2 }
 0x19f   : > { %p629_p6 = scmp.ne.s32.totalorder %s627_s5, %s628_s8  ;;  %p633_p10 = scmp.lt.s32.totalorder %s627_s5, %s865_s3 }
 0x1a0   : > { %v337_v45 = vadd.f32 %v335_v44, %v301_v43  ;;  %p634_p11 = scmp.lt.s32.totalorder %s632_s29, %s628_s8 }
 0x1a1   : > { %p630_p7 = pnand %p629_p6, %p763_p4 }
 0x1a2   : > { %339 = vst.msk [vmem:[%s798_s14] sm:$0x1] %vm237_vm2, %v337_v45  ;;  %p635_p12 = por %p634_p11, %p633_p10 }
 0x1a3   : > { %p631_p9 = pneg %p630_p7 }
 0x1a5   : > { %p636_p13 = pnand %p635_p12, %p631_p9 }
 0x1a7   : > { %639 = shalt.err (!%p636_p13)
}
 0x1a8   : > { %519 = dma.vmem_to_hbm [thread:$0]  (%p763_p4), %s394_s18, 16, %s396_s13, %s379_s30  }
 0x1a9 PF: > { %p530_p0 = scmp.ge.s32.totalorder %s694_s20, 2  ;;  %s420_s12 = sand.u32 1, %s674_s15  }
 0x1aa   : > { %s421_s14 = scalar_lea.sflag [#allocation3], %s420_s12 }
 0x1ab   : > { %p524_p1 = pnand %p530_p0, %p770_p8 }
 0x1ad   : > { %p525_p2 = pneg %p524_p1 }
 0x1af   : > { %665 = dma.done.wait (%p525_p2), %s421_s14, 16  }
 0x1b0   : > { %667 = vsyncadd (%p525_p2), %s421_s14, 4294967280  ;;  %s430_s10 = scalar_lea.sflag [#allocation5], %s420_s12 }
 0x1b1   : > { %669 = dma.done.wait (%p525_p2), %s430_s10, 16  }
 0x1b2   : > { %671 = vsyncadd (%p525_p2), %s430_s10, 4294967280  ;;  %s21_s20 = sadd.s32 1, %s694_s20   ;;  %s869_s15 = smov %s678_s16 }
 0x1b3   : > { %p18_p3 = scmp.ge.s32.totalorder %s21_s20, 4   ;;  %s870_s16 = smov %s682_s17 }
 0x1b4   : > { %s871_s17 = smov %s776_s28  ;;  %s872_s18 = smov %s690_s19 }
 0x1b5   : > { %s873_s19 = smov %s875_s23  ;;  %20 = sbr.rel (!%p18_p3) target bundleno = 6 (0x6), region = 102 }
 0x1ba   :  { %435 = vsyncpa [#allocation3], 1 }
 0x1bb   :  { %437 = vsyncpa [#allocation3 + $0x1], 1 }
 0x1bc   :  { %438 = vsyncpa [#allocation5], 1 }
 0x1bd   :  { %440 = vsyncpa [#allocation5 + $0x1], 1 }

</bundles_post_ra>
